<compile_context>
chip_gen: v5e
topology: v5e:2x2
jax: 0.10.0
libtpu: 0.0.40
codegen_flags: <defaults>
</compile_context>

<pallas_src>
import math

import jax
import jax.numpy as jnp
from jax.experimental import pallas as pl
from jax.experimental.pallas import tpu as pltpu

F32 = jnp.float32

# ---- small synthetic config consistent with the module -----------------------
B = 2              # batch
TIME_CH = 32       # time_channels
TIME_OUT_CH = 64   # time_out_channels
COND_CH = 64       # cond ("style") feature width -- Identity passthrough

# ---- packed-parameter slab layout (lane-aligned, sublane-aligned) ------------
LANES = 128
IN_PAD = ((TIME_CH + 7) // 8) * 8                      # 32  (rows of w1)
HID_PAD = ((TIME_OUT_CH + LANES - 1) // LANES) * LANES  # 128 (cols of w1 / rows of w2)
OUT_PAD = ((TIME_OUT_CH + LANES - 1) // LANES) * LANES  # 128 (cols of w2 / output lanes)
assert HID_PAD == LANES and OUT_PAD == LANES            # single-slab scheme for this config

R_W1 = 0                      # rows [0, 32)   : w1 (zero-padded to 128 lanes)
R_B1 = R_W1 + IN_PAD          # rows [32, 40)  : b1 in row 32, rest zero
R_W2 = R_B1 + 8               # rows [40, 168) : w2 (zero-padded rows & lanes)
R_B2 = R_W2 + HID_PAD         # rows [168,176) : b2 in row 168, rest zero
ROWS = R_B2 + 8               # 176 rows total -> (176, 128) f32 slab (~88 KB)


# ================================ kernel ======================================
def _time_embed_kernel(t_ref, p_ref, o_ref):
    """Fused time_embed: Linear -> SiLU -> Linear, all resident in VMEM/vregs."""
    t = t_ref[...]                                  # (B, TIME_CH)
    w1 = p_ref[R_W1:R_W1 + TIME_CH, :]              # (TIME_CH, 128), cols >=64 are 0
    b1 = p_ref[R_B1:R_B1 + 1, :]                    # (1, 128),      lanes >=64 are 0
    w2 = p_ref[R_W2:R_B2, :]                        # (128, 128),    pad rows/cols 0
    b2 = p_ref[R_B2:R_B2 + 1, :]                    # (1, 128)

    h = jnp.dot(t, w1, preferred_element_type=F32) + b1       # (B, 128)
    h = h * jax.nn.sigmoid(h)                                  # SiLU (EUP exp)
    o_ref[...] = jnp.dot(h, w2, preferred_element_type=F32) + b2  # (B, 128) lane-dense


def time_embed(packed_params, t):
    vmem = pl.BlockSpec(memory_space=pltpu.MemorySpace.VMEM)
    n = t.shape[0]
    cost = pl.CostEstimate(
        flops=2 * n * (TIME_CH * TIME_OUT_CH + TIME_OUT_CH * TIME_OUT_CH),
        transcendentals=n * TIME_OUT_CH,
        bytes_accessed=4 * (n * TIME_CH + ROWS * LANES + n * OUT_PAD),
    )
    out = pl.pallas_call(
        _time_embed_kernel,
        out_shape=jax.ShapeDtypeStruct((n, OUT_PAD), F32),
        in_specs=[vmem, vmem],
        out_specs=vmem,
        cost_estimate=cost,
    )(t, packed_params)
    # Lane-dense (B, 128) slab out of the kernel; trim back to the module's width.
    return out[:, :TIME_OUT_CH]


# ============================== module forward ================================
def forward(params, time_emb=None, cond=None, model_kwargs=None):
    """Mirrors TimeStyleSeperateEmbed.forward."""
    if time_emb is not None:
        time_emb = time_embed(params["packed"], time_emb)
    style = cond  # nn.Identity(): passthrough, no kernel / no HBM copy emitted
    return {"style": style, "time_emb": time_emb, "emb": style}


# ================================ params ======================================
def _init_linear(key, fan_in, fan_out):
    k1, k2 = jax.random.split(key)
    s = 1.0 / math.sqrt(fan_in)
    return (jax.random.uniform(k1, (fan_in, fan_out), F32, -s, s),
            jax.random.uniform(k2, (fan_out,), F32, -s, s))


def _pack_params(w1, b1, w2, b2):
    """One (ROWS, 128) f32 slab: zero-padded, (8,128)-aligned, single DMA."""
    slab = jnp.zeros((ROWS, LANES), F32)
    slab = slab.at[R_W1:R_W1 + TIME_CH, :TIME_OUT_CH].set(w1)
    slab = slab.at[R_B1, :TIME_OUT_CH].set(b1)
    slab = slab.at[R_W2:R_W2 + TIME_OUT_CH, :TIME_OUT_CH].set(w2)
    slab = slab.at[R_B2, :TIME_OUT_CH].set(b2)
    return slab


def make_params(key):
    k1, k2 = jax.random.split(key)
    w1, b1 = _init_linear(k1, TIME_CH, TIME_OUT_CH)
    w2, b2 = _init_linear(k2, TIME_OUT_CH, TIME_OUT_CH)
    packed = _pack_params(w1, b1, w2, b2)
    return {"w1": w1, "b1": b1, "w2": w2, "b2": b2, "packed": packed}


# =========================== pure-JAX reference ===============================
def forward_ref(params, time_emb=None, cond=None):
    te = None
    if time_emb is not None:
        h = time_emb @ params["w1"] + params["b1"]
        h = h * jax.nn.sigmoid(h)
        te = h @ params["w2"] + params["b2"]
    return {"style": cond, "time_emb": te, "emb": cond}


# ================================== main ======================================
if __name__ == "__main__":
    key = jax.random.PRNGKey(0)
    kt, kc, kp = jax.random.split(key, 3)

    t_in = jax.random.normal(kt, (B, TIME_CH), F32)      # time embedding input
    cond = jax.random.normal(kc, (B, COND_CH), F32)      # style / cond input
    params = make_params(kp)

    out = forward(params, time_emb=t_in, cond=cond)
    te = jax.block_until_ready(out["time_emb"])

    ref = forward_ref(params, time_emb=t_in, cond=cond)

    assert te.shape == (B, TIME_OUT_CH), te.shape
    assert te.dtype == jnp.float32
    err = float(jnp.max(jnp.abs(te - ref["time_emb"])))
    assert err < 1e-5, f"max abs error vs reference: {err}"
    # Identity branch: style and emb are the untouched cond tensor.
    assert out["style"] is cond and out["emb"] is cond
    # time_emb=None path mirrors the module as well.
    out_none = forward(params, time_emb=None, cond=cond)
    assert out_none["time_emb"] is None and out_none["style"] is cond

    print("KERNEL_OK")
</pallas_src>

<mosaic_0001>
module attributes {stable_mosaic.version = 11 : i64} {
  func.func @_time_embed_kernel(%arg0: memref<2x32xf32, #tpu.memory_space<vmem>>, %arg1: memref<176x128xf32, #tpu.memory_space<vmem>>, %arg2: memref<2x128xf32, #tpu.memory_space<vmem>>) attributes {dimension_semantics = [], scalar_prefetch = 0 : i64, scratch_operands = 0 : i64, tpu.core_type = #tpu.core_type<tc>} {
    %c0 = arith.constant 0 : index
    %c0_0 = arith.constant 0 : index
    %0 = vector.load %arg0[%c0, %c0_0] : memref<2x32xf32, #tpu.memory_space<vmem>>, vector<2x32xf32>
    %c0_1 = arith.constant 0 : index
    %c0_2 = arith.constant 0 : index
    %1 = vector.load %arg1[%c0_1, %c0_2] : memref<176x128xf32, #tpu.memory_space<vmem>>, vector<32x128xf32>
    %c32 = arith.constant 32 : index
    %c0_3 = arith.constant 0 : index
    %2 = vector.load %arg1[%c32, %c0_3] : memref<176x128xf32, #tpu.memory_space<vmem>>, vector<1x128xf32>
    %c40 = arith.constant 40 : index
    %c0_4 = arith.constant 0 : index
    %3 = vector.load %arg1[%c40, %c0_4] : memref<176x128xf32, #tpu.memory_space<vmem>>, vector<128x128xf32>
    %c168 = arith.constant 168 : index
    %c0_5 = arith.constant 0 : index
    %4 = vector.load %arg1[%c168, %c0_5] : memref<176x128xf32, #tpu.memory_space<vmem>>, vector<1x128xf32>
    %cst = arith.constant dense<0.000000e+00> : vector<2x128xf32>
    %5 = tpu.matmul %0, %1, %cst {dimension_numbers = #tpu.dot_dimension_numbers<[1], [0], [0], [1], [0, 0, 1, 1], [], []>} : vector<2x32xf32>, vector<32x128xf32>, vector<2x128xf32> -> vector<2x128xf32>
    %6 = vector.broadcast %2 : vector<1x128xf32> to vector<2x128xf32>
    %7 = arith.addf %5, %6 : vector<2x128xf32>
    %8 = arith.negf %7 : vector<2x128xf32>
    %9 = math.exp %8 : vector<2x128xf32>
    %cst_6 = arith.constant 1.000000e+00 : f32
    %10 = vector.broadcast %cst_6 : f32 to vector<2x128xf32>
    %11 = arith.addf %10, %9 : vector<2x128xf32>
    %12 = arith.divf %10, %11 : vector<2x128xf32>
    %13 = arith.mulf %7, %12 : vector<2x128xf32>
    %cst_7 = arith.constant dense<0.000000e+00> : vector<2x128xf32>
    %14 = tpu.matmul %13, %3, %cst_7 {dimension_numbers = #tpu.dot_dimension_numbers<[1], [0], [0], [1], [0, 0, 1, 1], [], []>} : vector<2x128xf32>, vector<128x128xf32>, vector<2x128xf32> -> vector<2x128xf32>
    %15 = vector.broadcast %4 : vector<1x128xf32> to vector<2x128xf32>
    %16 = arith.addf %14, %15 : vector<2x128xf32>
    %c0_8 = arith.constant 0 : index
    %c0_9 = arith.constant 0 : index
    %17 = vector.load %arg2[%c0_8, %c0_9] : memref<2x128xf32, #tpu.memory_space<vmem>>, vector<2x128xf32>
    tpu.vector_store %arg2[%c0_8, %c0_9], %16 {strides = array<i32>} : memref<2x128xf32, #tpu.memory_space<vmem>>, vector<2x128xf32>,
    return
  }
}

</mosaic_0001>

<bundles_post_ra>
// kernel: tpu_custom_call.1
= control target key start
LH: loop header
LB: loop body
LE: loop exit
PB: predicated region body
PF: predicated region fallthrough
CT: control target
= control target key end

     0   :  { %7 = vsyncpa [#allocation3], 0  ;;  %s270_s0 = inlined_call_operand.hbm [shape: f32[2,32], index: 0, kind: input, shape index: {}]   ;;  %s271_s1 = inlined_call_operand.hbm [shape: f32[176,128], index: 1, kind: input, shape index: {}]   ;;  %s272_s2 = inlined_call_operand.hbm [shape: f32[2,128], index: 2, kind: output, shape index: {}]  }
   0x1   :  { %8 = vsyncpa [#allocation6], 0 }
   0x2   :  { %9 = vsyncpa [#allocation4], 0  ;;  %s15_s11 = sshll.u32 %s270_s0, 4  ;;  %s241_s12 = smov [#allocation2]   ;;  %s16_s11 = int_to_ptr.hbm [resolvable:$true] %s15_s11 }
   0x3   :  { %s17_s13 = sshll.u32 %s241_s12, 4  ;;  %s25_s16 = sshll.u32 %s271_s1, 4  ;;  %s18_s13 = int_to_ptr.vmem [resolvable:$true] %s17_s13  ;;  %s26_s16 = int_to_ptr.hbm [resolvable:$true] %s25_s16 }
   0x4   :  { %20 = dma.hbm_to_vmem [thread:$0]  %s16_s11, 32, %s18_s13, [#allocation3]  }
   0x5   :  { %s242_s17 = smov [#allocation5]   ;;  %s243_s19 = smov 128  }
   0x6   :  { %s27_s18 = sshll.u32 %s242_s17, 4  ;;  %s244_s20 = smov 8   ;;  %s28_s18 = int_to_ptr.vmem [resolvable:$true] %s27_s18 }
   0x7   :  { %33 = dma.hbm_to_vmem [thread:$0]  %s26_s16, 2816, %s28_s18, [#allocation6], %s243_s19, %s243_s19, %s244_s20  }
   0x8   :  { %235 = dma.done.wait [#allocation3], 32  }
   0x9   :  { %236 = vsyncadd [#allocation3], 4294967264 }
   0xa   :  { %237 = dma.done.wait [#allocation6], 2816  }
   0xb   :  { %238 = vsyncadd [#allocation6], 4294964480  ;;  %v46_v0 = vld [vmem:[#allocation5 + $0x18] sm:$0xff]  ;;  %v45_v1 = vld [vmem:[#allocation5 + $0x10] sm:$0xff]  ;;  %vm66_vm0 = vcmask 261120   ;;  %s245_s0 = smov [#allocation7]  }
   0xc   :  { %82 = vmatpush.msra.mxu0 %v46_v0  ;;  %v44_v2 = vld [vmem:[#allocation5 + $0x8] sm:$0xff]  ;;  %v43_v3 = vld [vmem:[#allocation5] sm:$0xff]  ;;  %v42_v4 = vld [vmem:[#allocation2] sm:$0x3]  ;;  %s137_s1 = sshll.u32 %s245_s0, 4  ;;  %s139_s23 = sshll.u32 %s272_s2, 4  ;;  %s138_s1 = int_to_ptr.vmem [resolvable:$true] %s137_s1  ;;  %s140_s23 = int_to_ptr.hbm [resolvable:$true] %s139_s23 }
   0xd   :  { %v63_v5 = vld [vmem:[#allocation5 + $0xa0] sm:$0xff]  ;;  %v62_v6 = vld [vmem:[#allocation5 + $0x98] sm:$0xff]  ;;  %v61_v7 = vld [vmem:[#allocation5 + $0x90] sm:$0xff] }
   0xe   :  { %83 = vmatpush.msra.mxu0 %v45_v1  ;;  %111 = vmatpush.msra.mxu1 %v63_v5  ;;  %v60_v8 = vld [vmem:[#allocation5 + $0x88] sm:$0xff]  ;;  %v59_v9 = vld [vmem:[#allocation5 + $0x80] sm:$0xff]  ;;  %v58_v10 = vld [vmem:[#allocation5 + $0x78] sm:$0xff] }
   0xf   :  { %v57_v11 = vld [vmem:[#allocation5 + $0x70] sm:$0xff]  ;;  %v56_v12 = vld [vmem:[#allocation5 + $0x68] sm:$0xff]  ;;  %v55_v13 = vld [vmem:[#allocation5 + $0x60] sm:$0xff] }
  0x10   :  { %84 = vmatpush.msra.mxu0 %v44_v2  ;;  %112 = vmatpush.msra.mxu1 %v62_v6  ;;  %v54_v14 = vld [vmem:[#allocation5 + $0x58] sm:$0xff]  ;;  %v53_v15 = vld [vmem:[#allocation5 + $0x50] sm:$0xff]  ;;  %v52_v16 = vld [vmem:[#allocation5 + $0x48] sm:$0xff] }
  0x11   :  { %v51_v17 = vld [vmem:[#allocation5 + $0x40] sm:$0xff]  ;;  %v50_v18 = vld [vmem:[#allocation5 + $0x38] sm:$0xff]  ;;  %v49_v19 = vld [vmem:[#allocation5 + $0x30] sm:$0xff] }
  0x12   :  { %85 = vmatpush.msra.mxu0 %v43_v3  ;;  %113 = vmatpush.msra.mxu1 %v61_v7  ;;  %v157_v20 = vld [vmem:[#allocation5 + $0x20] ss:$0 sm:$0xff]  ;;  %v48_v21 = vld [vmem:[#allocation5 + $0x28] sm:$0xff] }
  0x13   :  { %150 = vmatmul.msk.f32.vlgmr.msra.gmra.mxu0 %vm66_vm0, %v42_v4  ;;  %v158_v38 = vld [vmem:[#allocation5 + $0xa8] ss:$0 sm:$0xff] }
  0x14   :  { %114 = vmatpush.msra.mxu1 %v60_v8 }
  0x16   :  { %115 = vmatpush.msra.mxu1 %v59_v9 }
  0x18   :  { %116 = vmatpush.msra.mxu1 %v58_v10 }
  0x1a   :  { %117 = vmatpush.msra.mxu1 %v57_v11 }
  0x1c   :  { %118 = vmatpush.msra.mxu1 %v56_v12 }
  0x1e   :  { %119 = vmatpush.msra.mxu1 %v55_v13 }
  0x20   :  { %120 = vmatpush.msra.mxu1 %v54_v14 }
  0x22   :  { %121 = vmatpush.msra.mxu1 %v53_v15 }
  0x24   :  { %122 = vmatpush.msra.mxu1 %v52_v16 }
  0x26   :  { %123 = vmatpush.msra.mxu1 %v51_v17 }
  0x28   :  { %124 = vmatpush.msra.mxu1 %v50_v18 }
  0x2a   :  { %125 = vmatpush.msra.mxu1 %v49_v19 }
  0x2c   :  { %126 = vmatpush.msra.mxu1 %v48_v21 }
  0x90   :  { %v87_v22 = vpop.f32.mrf.mxu0 }
  0x91   :  { %v88_v23 = vadd.f32 %v157_v20, %v87_v22 }
  0x93   :  { %v151_v24 = vmul.f32 -1.442695, %v88_v23 }
  0x95   :  { %159 = vpow2.f32 %v151_v24 }
  0x9b   :  { %v160_v25 = vpop.eup %159 }
  0x9c   :  { %v93_v26 = vadd.f32 1.0, %v160_v25 }
  0x9e   :  { %161 = vrcp.f32 %v93_v26  ;;  %v105_v30 = vand.u32 2147483648, %v93_v26  ;;  %v103_v32 = vand.u32 2147483647, %v93_v26  ;;  %vm99_vm2 = vweird.f32 %v93_v26 }
  0xa0   :  { %v106_v34 = vor.u32 1.1754944e-38, %v105_v30  ;;  %vm104_vm4 = vcmp.eq.f32.partialorder %v103_v32, 8.507059e+37 }
  0xa4   :  { %v162_v27 = vpop.eup %161 }
  0xa5   :  { %v95_v28 = vmul.f32 %v162_v27, %v93_v26  ;;  %vm100_vm1 = vweird.f32 %v162_v27 }
  0xa6   :  { %vm101_vm3 = vmor %vm99_vm2, %vm100_vm1 }
  0xa7   :  { %v96_v29 = vsub.f32 1.0, %v95_v28 }
  0xa9   :  { %v97_v31 = vmul.f32 %v162_v27, %v96_v29 }
  0xab   :  { %v98_v33 = vadd.f32 %v162_v27, %v97_v31 }
  0xad   :  { %v102_v35 = vsel %vm101_vm3, %v162_v27, %v98_v33 }
  0xae   :  { %v107_v36 = vsel %vm104_vm4, %v106_v34, %v102_v35 }
  0xaf   :  { %v109_v37 = vmul.f32 %v107_v36, %v88_v23 }
  0xb1   :  { %127 = vmatmul.f32.vlgmr.msra.gmra.mxu1 %v109_v37 }
 0x12e   :  { %v128_v39 = vpop.f32.mrf.mxu1 }
 0x12f   :  { %v129_v40 = vadd.f32 %v158_v38, %v128_v39 }
 0x131   :  { %131 = vst [vmem:[#allocation7] sm:$0x3] %v129_v40 }
 0x132   :  { %142 = dma.vmem_to_hbm [thread:$0]  %s138_s1, 32, %s140_s23, [#allocation4]  }
 0x133   :  { %239 = dma.done.wait [#allocation4], 32  }
 0x134   :  { %240 = vsyncadd [#allocation4], 4294967264 }
 0x135   :  { %147 = vsyncpa [#allocation3], 1 }
 0x136   :  { %148 = vsyncpa [#allocation6], 1 }
 0x137   :  { %149 = vsyncpa [#allocation4], 1 }

</bundles_post_ra>
